<compile_context>
chip_gen: v6e
topology: v6e:2x2x1
jax: 0.10.0
libtpu: 0.0.40
codegen_flags: <defaults>
</compile_context>

<pallas_src>
import functools
import math

import jax
import jax.numpy as jnp
from jax.experimental import pallas as pl
from jax.experimental.pallas import tpu as pltpu


def _int8_quant_kernel(x_ref, o_ref, *, groups_per_row: int):
    """Absmax int8 fake-quant of one row tile; reduction over the last orig dim."""
    xn = x_ref[...]                                   # (tm, k*D), native dtype
    tm = xn.shape[0]
    if groups_per_row > 1:
        # TODO(synk): on v7x check the bundle for a vreg relayout from this
        # (tm, k*D) -> (tm, k, D) reshape; if it binds, replace with an XLU
        # segmented max that stays in the 128-lane-dense layout.
        xn = xn.reshape(tm, groups_per_row, xn.shape[1] // groups_per_row)

    # abs / max are exact in the native float dtype -> reduce before casting.
    gamma = jnp.max(jnp.abs(xn), axis=-1, keepdims=True).astype(jnp.float32)
    x = xn.astype(jnp.float32)

    inv = pl.reciprocal(gamma + 1e-5, approx=False)   # per-group, exact
    # clamp(-128, 127) omitted: provably a no-op since |x| <= gamma < gamma+1e-5
    # (keep it if approx=True reciprocal is ever used).
    x_q = jnp.round(x * (127.0 * inv))                # quantize
    out = x_q * (gamma * (1.0 / 127.0))               # dequantize (torch: * gamma / 127)

    if groups_per_row > 1:
        out = out.reshape(tm, -1)                     # back to (tm, k*D)
    o_ref[...] = out.astype(o_ref.dtype)


def int8_quantize(x: jax.Array, *, target_block_bytes: int = 2 * 1024 * 1024) -> jax.Array:
    """Fake int8 quantization with absmax scaling over the last axis (torch dim=-1)."""
    orig_shape = x.shape
    D = orig_shape[-1]
    R = 1
    for s in orig_shape[:-1]:
        R *= s
    if R == 0 or D == 0:
        return x
    x2 = x.reshape(R, D)

    # Lane-dense packing: fold k = lcm(D, 128) // D quantization groups into one
    # 128-lane-aligned row so output stores are full-width vst, not masked.
    k = 1
    if D % 128 != 0:
        kc = math.lcm(D, 128) // D
        if kc * D <= 8192:                     # keep packed row width sane
            k = kc
    pad_rows = 0
    if k > 1:
        pad_rows = (-R) % k
        if pad_rows:
            x2 = jnp.concatenate([x2, jnp.zeros((pad_rows, D), x2.dtype)], axis=0)
        x2 = x2.reshape((R + pad_rows) // k, k * D)
    Rp, Dp = x2.shape

    # VMEM guard: a single minimal (8, Dp) block (in+out double-buffered plus
    # f32 intermediates) must fit the scoped limit with headroom.
    min_rows = min(Rp, 8)
    if min_rows * Dp * (4 * x.dtype.itemsize + 12) > 24 * 1024 * 1024:
        # TODO(synk): last dim too wide for one VMEM row-block; plain-XLA fallback
        # (a D-chunked two-pass Pallas max would be needed to keep it in-kernel).
        gamma = jnp.max(jnp.abs(x), axis=-1, keepdims=True)
        x_q = jnp.clip(jnp.round(x * 127.0 / (gamma + 1e-5)), -128.0, 127.0)
        return (x_q * gamma / 127.0).astype(x.dtype)

    # Tile sizing: ~2 MiB per block, rows a multiple of 32 (native sublane tile
    # for int8/fp8; also covers bf16/f32), and >= 8 grid steps when enough rows
    # exist so both v7x TensorCores get >= 4 pipelined steps each.
    ROW_ALIGN = 32
    MIN_STEPS = 8
    bytes_per_row = max(1, Dp * x.dtype.itemsize)
    rows_budget = max(ROW_ALIGN, target_block_bytes // bytes_per_row)
    if Rp >= MIN_STEPS * ROW_ALIGN:
        rows_budget = min(rows_budget, pl.cdiv(Rp, MIN_STEPS))
    if Rp < ROW_ALIGN:
        tile_rows = Rp                         # full dim — always legal
    else:
        tile_rows = max(ROW_ALIGN, (min(rows_budget, Rp) // ROW_ALIGN) * ROW_ALIGN)
    grid = (pl.cdiv(Rp, tile_rows),)

    kernel = functools.partial(_int8_quant_kernel, groups_per_row=k)
    out = pl.pallas_call(
        kernel,
        out_shape=jax.ShapeDtypeStruct((Rp, Dp), x.dtype),
        grid_spec=pltpu.PrefetchScalarGridSpec(
            num_scalar_prefetch=0,
            grid=grid,
            in_specs=[pl.BlockSpec((tile_rows, Dp), lambda i: (i, 0))],
            out_specs=pl.BlockSpec((tile_rows, Dp), lambda i: (i, 0)),
        ),
        compiler_params=pltpu.CompilerParams(
            dimension_semantics=("parallel",),
            vmem_limit_bytes=32 * 1024 * 1024,
        ),
    )(x2)

    if k > 1:
        out = out.reshape(Rp * k, D)
        if pad_rows:
            out = out[:R]
    return out.reshape(orig_shape)


if __name__ == "__main__":
    key = jax.random.PRNGKey(0)
    # Small NCHW-like input: batch=2, channels=4, spatial=16x16; quantization
    # is along the last (width) axis, matching torch's dim=-1.
    x = jax.random.normal(key, (2, 4, 16, 16), dtype=jnp.float32)

    y = jax.block_until_ready(int8_quantize(x))

    # Pure-JAX reference (torch semantics: round(x*127/(gamma+1e-5)) clamped to
    # [-128, 127], then * gamma / 127; written in the kernel's op order).
    gamma = jnp.max(jnp.abs(x), axis=-1, keepdims=True)
    inv = 1.0 / (gamma + 1e-5)
    x_q = jnp.clip(jnp.round(x * (127.0 * inv)), -128.0, 127.0)
    ref = x_q * (gamma * (1.0 / 127.0))
    assert jnp.allclose(y, ref, atol=1e-5, rtol=1e-5), "mismatch vs reference"

    print("KERNEL_OK")
</pallas_src>

<mosaic_0001>
module attributes {stable_mosaic.version = 11 : i64} {
  func.func @_int8_quant_kernel(%arg0: i32, %arg1: memref<16x128xf32, #tpu.memory_space<vmem>>, %arg2: memref<16x128xf32, #tpu.memory_space<vmem>>) attributes {dimension_semantics = [#tpu.dimension_semantics<parallel>], iteration_bounds = array<i64: 1>, scalar_prefetch = 0 : i64, scratch_operands = 0 : i64, tpu.core_type = #tpu.core_type<tc>, window_params = [{transform_indices = @transform_0, window_bounds = array<i64: 16, 128>}, {transform_indices = @transform_1, window_bounds = array<i64: 16, 128>}]} {
    %c0 = arith.constant 0 : index
    %c0_0 = arith.constant 0 : index
    %0 = vector.load %arg1[%c0, %c0_0] : memref<16x128xf32, #tpu.memory_space<vmem>>, vector<16x128xf32>
    %1 = vector.shape_cast %0 : vector<16x128xf32> to vector<16x8x16xf32>
    %2 = math.absf %1 : vector<16x8x16xf32>
    %cst = arith.constant dense<0xFF800000> : vector<16x8xf32>
    %3 = vector.multi_reduction <maximumf>, %2, %cst [2] : vector<16x8x16xf32> to vector<16x8xf32>
    %4 = vector.shape_cast %3 : vector<16x8xf32> to vector<16x8x1xf32>
    %cst_1 = arith.constant 9.99999974E-6 : f32
    %5 = vector.broadcast %cst_1 : f32 to vector<16x8x1xf32>
    %6 = arith.addf %4, %5 : vector<16x8x1xf32>
    %7 = tpu.reciprocal %6 : vector<16x8x1xf32> -> vector<16x8x1xf32>
    %cst_2 = arith.constant 1.270000e+02 : f32
    %8 = vector.broadcast %cst_2 : f32 to vector<16x8x1xf32>
    %9 = arith.mulf %8, %7 : vector<16x8x1xf32>
    %10 = vector.broadcast %9 : vector<16x8x1xf32> to vector<16x8x16xf32>
    %11 = arith.mulf %1, %10 : vector<16x8x16xf32>
    %12 = math.roundeven %11 : vector<16x8x16xf32>
    %cst_3 = arith.constant 0.00787401571 : f32
    %13 = vector.broadcast %cst_3 : f32 to vector<16x8x1xf32>
    %14 = arith.mulf %4, %13 : vector<16x8x1xf32>
    %15 = vector.broadcast %14 : vector<16x8x1xf32> to vector<16x8x16xf32>
    %16 = arith.mulf %12, %15 : vector<16x8x16xf32>
    %17 = vector.shape_cast %16 : vector<16x8x16xf32> to vector<16x128xf32>
    %c0_4 = arith.constant 0 : index
    %c0_5 = arith.constant 0 : index
    %18 = vector.load %arg2[%c0_4, %c0_5] : memref<16x128xf32, #tpu.memory_space<vmem>>, vector<16x128xf32>
    tpu.vector_store %arg2[%c0_4, %c0_5], %17 {strides = array<i32>} : memref<16x128xf32, #tpu.memory_space<vmem>>, vector<16x128xf32>,
    return
  }
  func.func @transform_0(%arg0: i32) -> (i32, i32) {
    %c0_i32 = arith.constant 0 : i32
    %c0_i32_0 = arith.constant 0 : i32
    return %arg0, %c0_i32 : i32, i32
  }
  func.func @transform_1(%arg0: i32) -> (i32, i32) {
    %c0_i32 = arith.constant 0 : i32
    %c0_i32_0 = arith.constant 0 : i32
    return %arg0, %c0_i32 : i32, i32
  }
}

</mosaic_0001>

<bundles_post_ra>
// kernel: tpu_custom_call.1
= control target key start
LH: loop header
LB: loop body
LE: loop exit
PB: predicated region body
PF: predicated region fallthrough
CT: control target
= control target key end

     0   :  { %6 = vsyncpa [#allocation3], 0  ;;  %s1598_s0 = inlined_call_operand.hbm [shape: f32[16,128], index: 0, kind: input, shape index: {}]   ;;  %s1599_s1 = inlined_call_operand.hbm [shape: f32[16,128], index: 1, kind: output, shape index: {}]  }
   0x1   :  { %7 = vsyncpa [#allocation4], 0  ;;  %s1102_s6 = smov [#allocation2]  }
   0x2   :  { %s13_s7 = sshll.u32 %s1102_s6, 4  ;;  %s14_s7 = int_to_ptr.vmem [resolvable:$true] %s13_s7 }
   0x3   :  { %s1066_s8 = scalar_lea.vmem %s14_s7, 256  ;;  %p1071_p1 = scmp.lt.s32.totalorder %s14_s7, %s14_s7 }
   0x4   :  { %p1067_p0 = scmp.ne.s32.totalorder %s14_s7, %s1066_s8  ;;  %p1072_p2 = scmp.lt.s32.totalorder %s1066_s8, %s1066_s8 }
   0x6   :  { %p1073_p3 = por %p1072_p2, %p1071_p1 }
   0x8   :  { %p1074_p4 = pnand %p1073_p3, %p1067_p0 }
   0xa   :  { %1077 = shalt.err (!%p1074_p4)
}
   0xb   :  { %s1103_s9 = smov 128   ;;  %s1104_s10 = smov 8  }
   0xc   :  { %19 = dma.hbm_to_vmem [thread:$0]  %s1598_s0, 256, %s14_s7, [#allocation3], %s1103_s9, %s1103_s9, %s1104_s10  }
   0xd   :  { %1098 = dma.done.wait [#allocation3], 256  }
   0xe   :  { %1099 = vsyncadd [#allocation3], 4294967040  ;;  %v23_v0 = vld [vmem:[#allocation2] sm:$0xff]  ;;  %s1105_s13 = smov 96   ;;  %s1106_s14 = smov 112   ;;  %v1133_v1 = vld [vmem:[#allocation2 + $0x8] sm:$0xff]  ;;  %v74_v10 = vlaneseq }
   0xf   :  { %33 = vrot.lane.b32.xlu1 %v23_v0, %s1105_s13  ;;  %27 = vrot.lane.b32.xlu0 %v23_v0, %s1106_s14  ;;  %s1107_s15 = smov 80   ;;  %s1108_s0 = smov 64   ;;  %v1112_v8 = vmov 1983009808   ;;  %v1113_v20 = vmov 1934713408  }
  0x10   :  { %s1109_s16 = smov 48   ;;  %s1110_s17 = smov 32   ;;  %v72_v9 = vunpack.c.l.s4 %v1112_v8  ;;  %v75_v14 = vshrl.u32 %v74_v10, 7  ;;  %v136_v21 = vunpack.c.l.s4 %v1113_v20  ;;  %vm357_vm0 = vcmask 130048  }
  0x11   :  { %s1111_s18 = smov 16   ;;  %s1114_s19 = smov [#allocation5]  }
  0x12   :  { %v73_v13 = vunpack.c.0.s8 %v72_v9  ;;  %v137_v28 = vunpack.c.0.s8 %v136_v21  ;;  %s873_s20 = sshll.u32 %s1114_s19, 4  ;;  %s874_s20 = int_to_ptr.vmem [resolvable:$true] %s873_s20 }
  0x13   :  { %35 = vrot.lane.b32.xlu1 %v1133_v1, %s1105_s13  ;;  %29 = vrot.lane.b32.xlu0 %v1133_v1, %s1106_s14  ;;  %s1078_s21 = scalar_lea.vmem %s874_s20, 256  ;;  %p1083_p6 = scmp.lt.s32.totalorder %s874_s20, %s874_s20 }
  0x14   :  { %v1164_v17 = vsub.s32 %v73_v13, %v75_v14  ;;  %v1176_v42 = vsub.s32 %v137_v28, %v75_v14  ;;  %p1079_p5 = scmp.ne.s32.totalorder %s874_s20, %s1078_s21  ;;  %p1084_p7 = scmp.lt.s32.totalorder %s1078_s21, %s1078_s21 }
  0x16   :  { %p1085_p8 = por %p1084_p7, %p1083_p6 }
  0x17   :  { %41 = vrot.lane.b32.xlu1 %v1133_v1, %s1107_s15  ;;  %39 = vrot.lane.b32.xlu0 %v23_v0, %s1107_s15 }
  0x18   :  { %p1086_p9 = pnand %p1085_p8, %p1079_p5 }
  0x1b   :  { %47 = vrot.lane.b32.xlu1 %v1133_v1, %s1108_s0  ;;  %45 = vrot.lane.b32.xlu0 %v23_v0, %s1108_s0 }
  0x1f   :  { %53 = vrot.lane.b32.xlu1 %v1133_v1, %s1109_s16  ;;  %51 = vrot.lane.b32.xlu0 %v23_v0, %s1109_s16 }
  0x23   :  { %59 = vrot.lane.b32.xlu1 %v1133_v1, %s1110_s17  ;;  %57 = vrot.lane.b32.xlu0 %v23_v0, %s1110_s17 }
  0x27   :  { %65 = vrot.lane.b32.xlu1 %v1133_v1, %s1111_s18  ;;  %63 = vrot.lane.b32.xlu0 %v23_v0, %s1111_s18 }
  0x81   :  { %v34_v2 = vpop.permute.xlu1 %33  ;;  %v28_v3 = vpop.permute.xlu0 %27 }
  0x82   :  { %v69_v18 = vcombine.low %v23_v0, %v34_v2  ;;  %v70_v22 = vcombine.high %v23_v0, %v34_v2 }
  0x84   :  { %v77_v26 = vrot.slane %v69_v18, %v1164_v17  ;;  %v84_v29 = vrot.slane %v70_v22, %v1164_v17 }
  0x85   :  { %v1154_v4 = vpop.permute.xlu1 %35  ;;  %v1156_v5 = vpop.permute.xlu0 %29 }
  0x86   :  { %v205_v31 = vcombine.low %v1133_v1, %v1154_v4  ;;  %v206_v47 = vcombine.high %v1133_v1, %v1154_v4 }
  0x88   :  { %v213_v48 = vrot.slane %v205_v31, %v1164_v17 }
  0x89   :  { %v1158_v6 = vpop.permute.xlu1 %41  ;;  %v40_v7 = vpop.permute.xlu0 %39 }
  0x8a   :  { %v85_v19 = vcombine.low %v28_v3, %v40_v7  ;;  %v86_v23 = vcombine.high %v28_v3, %v40_v7  ;;  %v221_v32 = vcombine.low %v1156_v5, %v1158_v6 }
  0x8c   :  { %v93_v27 = vrot.slane %v85_v19, %v1164_v17  ;;  %v100_v30 = vrot.slane %v86_v23, %v1164_v17  ;;  %v229_v51 = vrot.slane %v221_v32, %v1164_v17 }
  0x8d   :  { %v1160_v11 = vpop.permute.xlu1 %47  ;;  %v46_v12 = vpop.permute.xlu0 %45 }
  0x8e   :  { %v133_v41 = vcombine.low %v77_v26, %v93_v27  ;;  %v134_v43 = vcombine.high %v77_v26, %v93_v27  ;;  %v149_v44 = vcombine.low %v84_v29, %v100_v30  ;;  %v150_v52 = vcombine.high %v84_v29, %v100_v30 }
  0x8f   :  { %v269_v13 = vcombine.low %v213_v48, %v229_v51  ;;  %v270_v27 = vcombine.high %v213_v48, %v229_v51 }
  0x90   :  { %v141_v60 = vrot.slane %v133_v41, %v1176_v42  ;;  %v157_v61 = vrot.slane %v149_v44, %v1176_v42  ;;  %v148_v62 = vrot.slane %v134_v43, %v1176_v42  ;;  %v164_v14 = vrot.slane %v150_v52, %v1176_v42 }
  0x91   :  { %v1162_v15 = vpop.permute.xlu1 %53  ;;  %v52_v16 = vpop.permute.xlu0 %51  ;;  %v277_v28 = vrot.slane %v269_v13, %v1176_v42 }
  0x95   :  { %v60_v24 = vpop.permute.xlu1 %59  ;;  %v58_v25 = vpop.permute.xlu0 %57 }
  0x96   :  { %v101_v33 = vcombine.low %v46_v12, %v58_v25  ;;  %v102_v34 = vcombine.high %v46_v12, %v58_v25  ;;  %v237_v37 = vcombine.low %v1160_v11, %v60_v24  ;;  %v238_v59 = vcombine.high %v1160_v11, %v60_v24 }
  0x97   :  { %v220_v11 = vrot.slane %v206_v47, %v1164_v17  ;;  %v222_v12 = vcombine.high %v1156_v5, %v1158_v6 }
  0x98   :  { %v109_v49 = vrot.slane %v101_v33, %v1164_v17  ;;  %v116_v50 = vrot.slane %v102_v34, %v1164_v17  ;;  %v245_v53 = vrot.slane %v237_v37, %v1164_v17 }
  0x99   :  { %v66_v35 = vpop.permute.xlu1 %65  ;;  %v64_v36 = vpop.permute.xlu0 %63  ;;  %v236_v26 = vrot.slane %v222_v12, %v1164_v17 }
  0x9a   :  { %v253_v38 = vcombine.low %v1162_v15, %v66_v35  ;;  %v117_v39 = vcombine.low %v52_v16, %v64_v36  ;;  %v118_v40 = vcombine.high %v52_v16, %v64_v36  ;;  %v254_v63 = vcombine.high %v1162_v15, %v66_v35 }
  0x9b   :  { %v252_v15 = vrot.slane %v238_v59, %v1164_v17  ;;  %v285_v37 = vcombine.low %v220_v11, %v236_v26  ;;  %v286_v48 = vcombine.high %v220_v11, %v236_v26 }
  0x9c   :  { %v125_v45 = vrot.slane %v117_v39, %v1164_v17  ;;  %v132_v46 = vrot.slane %v118_v40, %v1164_v17  ;;  %v261_v54 = vrot.slane %v253_v38, %v1164_v17  ;;  %v268_v16 = vrot.slane %v254_v63, %v1164_v17 }
  0x9d   :  { %v284_v38 = vrot.slane %v270_v27, %v1176_v42 }
  0x9e   :  { %v165_v55 = vcombine.low %v109_v49, %v125_v45  ;;  %v166_v56 = vcombine.high %v109_v49, %v125_v45  ;;  %v181_v57 = vcombine.low %v116_v50, %v132_v46  ;;  %v182_v58 = vcombine.high %v116_v50, %v132_v46 }
  0x9f   :  { %v301_v3 = vcombine.low %v245_v53, %v261_v54  ;;  %v302_v20 = vcombine.high %v245_v53, %v261_v54  ;;  %v317_v29 = vcombine.low %v252_v15, %v268_v16  ;;  %v318_v39 = vcombine.high %v252_v15, %v268_v16 }
  0xa0   :  { %v173_v0 = vrot.slane %v165_v55, %v1176_v42  ;;  %v189_v1 = vrot.slane %v181_v57, %v1176_v42  ;;  %v180_v2 = vrot.slane %v166_v56, %v1176_v42  ;;  %v196_v4 = vrot.slane %v182_v58, %v1176_v42 }
  0xa1   :  { %v309_v23 = vrot.slane %v301_v3, %v1176_v42  ;;  %v316_v32 = vrot.slane %v302_v20, %v1176_v42  ;;  %v325_v43 = vrot.slane %v317_v29, %v1176_v42  ;;  %v293_v49 = vrot.slane %v285_v37, %v1176_v42 }
  0xa2   :  { %v1197_v7 = vcombine.high %v141_v60, %v173_v0  ;;  %v1199_v8 = vcombine.low %v141_v60, %v173_v0  ;;  %v1201_v9 = vcombine.low %v157_v61, %v189_v1  ;;  %v1203_v10 = vcombine.low %v148_v62, %v180_v2 }
  0xa3   :  { %v1213_v21 = vcombine.low %v164_v14, %v196_v4  ;;  %v1215_v22 = vcombine.high %v148_v62, %v180_v2  ;;  %v1224_v30 = vcombine.low %v277_v28, %v309_v23  ;;  %v1226_v31 = vcombine.high %v157_v61, %v189_v1 }
  0xa4   :  { %v342_v18 = vand.u32 2147483647, %v1197_v7  ;;  %v341_v19 = vand.u32 2147483647, %v1199_v8  ;;  %v345_v24 = vand.u32 2147483647, %v1201_v9  ;;  %v1235_v41 = vcombine.low %v284_v38, %v316_v32 }
  0xa5   :  { %v343_v25 = vand.u32 2147483647, %v1203_v10  ;;  %v347_v35 = vand.u32 2147483647, %v1213_v21  ;;  %v344_v36 = vand.u32 2147483647, %v1215_v22  ;;  %v1241_v47 = vcombine.high %v164_v14, %v196_v4 }
  0xa6   :  { %v361_v5 = vsel %vm357_vm0, %v342_v18, -inf  ;;  %v358_v6 = vsel %vm357_vm0, %v341_v19, -inf  ;;  %v370_v33 = vsel %vm357_vm0, %v345_v24, -inf  ;;  %v349_v40 = vand.u32 2147483647, %v1224_v30 }
  0xa7   :  { %362 = vmax.xlane.f32.xlu1 %v361_v5  ;;  %359 = vmax.xlane.f32.xlu0 %v358_v6  ;;  %v364_v34 = vsel %vm357_vm0, %v343_v25, -inf  ;;  %v376_v44 = vsel %vm357_vm0, %v347_v35, -inf  ;;  %v367_v45 = vsel %vm357_vm0, %v344_v36, -inf  ;;  %v346_v46 = vand.u32 2147483647, %v1226_v31 }
  0xa8   :  { %v1244_v50 = vcombine.low %v293_v49, %v325_v43  ;;  %v1246_v51 = vcombine.high %v277_v28, %v309_v23  ;;  %v332_v52 = vrot.slane %v318_v39, %v1176_v42  ;;  %v382_v53 = vsel %vm357_vm0, %v349_v40, -inf }
  0xa9   :  { %v373_v54 = vsel %vm357_vm0, %v346_v46, -inf  ;;  %v351_v55 = vand.u32 2147483647, %v1235_v41  ;;  %v348_v56 = vand.u32 2147483647, %v1241_v47  ;;  %v300_v57 = vrot.slane %v286_v48, %v1176_v42 }
  0xaa   :  { %v353_v58 = vand.u32 2147483647, %v1244_v50  ;;  %v350_v62 = vand.u32 2147483647, %v1246_v51  ;;  %v1260_v63 = vcombine.high %v284_v38, %v316_v32  ;;  %v1266_v4 = vcombine.high %v293_v49, %v325_v43 }
  0xab   :  { %371 = vmax.xlane.f32.xlu1 %v370_v33  ;;  %365 = vmax.xlane.f32.xlu0 %v364_v34  ;;  %v1255_v59 = vcombine.low %v300_v57, %v332_v52  ;;  %v388_v60 = vsel %vm357_vm0, %v351_v55, -inf  ;;  %v379_v61 = vsel %vm357_vm0, %v348_v56, -inf  ;;  %v1271_v14 = vcombine.high %v300_v57, %v332_v52 }
  0xac   :  { %v394_v1 = vsel %vm357_vm0, %v353_v58, -inf  ;;  %v385_v2 = vsel %vm357_vm0, %v350_v62, -inf  ;;  %v352_v3 = vand.u32 2147483647, %v1260_v63  ;;  %v354_v13 = vand.u32 2147483647, %v1266_v4 }
  0xad   :  { %v355_v0 = vand.u32 2147483647, %v1255_v59  ;;  %v356_v16 = vand.u32 2147483647, %v1271_v14 }
  0xae   :  { %v391_v12 = vsel %vm357_vm0, %v352_v3, -inf  ;;  %v397_v15 = vsel %vm357_vm0, %v354_v13, -inf }
  0xaf   :  { %377 = vmax.xlane.f32.xlu1 %v376_v44  ;;  %368 = vmax.xlane.f32.xlu0 %v367_v45  ;;  %v400_v11 = vsel %vm357_vm0, %v355_v0, -inf  ;;  %v403_v18 = vsel %vm357_vm0, %v356_v16, -inf }
  0xb3   :  { %383 = vmax.xlane.f32.xlu1 %v382_v53  ;;  %374 = vmax.xlane.f32.xlu0 %v373_v54 }
  0xb7   :  { %389 = vmax.xlane.f32.xlu1 %v388_v60  ;;  %380 = vmax.xlane.f32.xlu0 %v379_v61 }
  0xbb   :  { %395 = vmax.xlane.f32.xlu1 %v394_v1  ;;  %386 = vmax.xlane.f32.xlu0 %v385_v2 }
  0xbf   :  { %401 = vmax.xlane.f32.xlu1 %v400_v11  ;;  %392 = vmax.xlane.f32.xlu0 %v391_v12 }
  0xc3   :  { %398 = vmax.xlane.f32.xlu0 %v397_v15 }
  0xc7   :  { %404 = vmax.xlane.f32.xlu0 %v403_v18 }
 0x130   :  { %v363_v19 = vpop.xlane.xlu1 %362  ;;  %v360_v20 = vpop.xlane.xlu0 %359 }
 0x131   :  { %v407_v23 = vadd.f32 1e-05, %v363_v19  ;;  %v406_v5 = vadd.f32 1e-05, %v360_v20  ;;  %v1305_v3 = vmul.f32 0.007874016, %v363_v19 }
 0x132   :  { %v1310_v13 = vmul.f32 0.007874016, %v360_v20 }
 0x133   :  { %1026 = vrcp.f32 %v407_v23 }
 0x134   :  { %1028 = vrcp.f32 %v406_v5  ;;  %v372_v6 = vpop.xlane.xlu1 %371  ;;  %v366_v24 = vpop.xlane.xlu0 %365 }
 0x135   :  { %v410_v25 = vadd.f32 1e-05, %v372_v6  ;;  %v408_v26 = vadd.f32 1e-05, %v366_v24 }
 0x137   :  { %1030 = vrcp.f32 %v410_v25 }
 0x138   :  { %1032 = vrcp.f32 %v408_v26  ;;  %v378_v27 = vpop.xlane.xlu1 %377  ;;  %v1276_v28 = vpop.xlane.xlu0 %368 }
 0x139   :  { %v412_v29 = vadd.f32 1e-05, %v378_v27  ;;  %v409_v32 = vadd.f32 1e-05, %v1276_v28 }
 0x13b   :  { %1034 = vrcp.f32 %v412_v29  ;;  %v1328_v29 = vmul.f32 0.007874016, %v378_v27 }
 0x13c   :  { %1036 = vrcp.f32 %v409_v32  ;;  %v1279_v33 = vpop.xlane.xlu1 %383  ;;  %v375_v34 = vpop.xlane.xlu0 %374 }
 0x13d   :  { %v414_v35 = vadd.f32 1e-05, %v1279_v33  ;;  %v411_v36 = vadd.f32 1e-05, %v375_v34 }
 0x13f   :  { %1038 = vrcp.f32 %v414_v35 }
 0x140   :  { %v1027_v37 = vpop.eup %1026  ;;  %v1282_v43 = vpop.xlane.xlu1 %389  ;;  %1040 = vrcp.f32 %v411_v36 }
 0x141   :  { %v1029_v38 = vpop.eup %1028  ;;  %v439_v39 = vmul.f32 127.0, %v1027_v37  ;;  %v1284_v44 = vpop.xlane.xlu0 %380  ;;  %v416_v52 = vadd.f32 1e-05, %v1282_v43 }
 0x142   :  { %v438_v40 = vmul.f32 127.0, %v1029_v38  ;;  %v413_v53 = vadd.f32 1e-05, %v1284_v44 }
 0x143   :  { %v1287_v48 = vmul.f32 %v439_v39, %v1197_v7  ;;  %1042 = vrcp.f32 %v416_v52 }
 0x144   :  { %v1031_v45 = vpop.eup %1030  ;;  %v1290_v49 = vmul.f32 %v438_v40, %v1199_v8  ;;  %1044 = vrcp.f32 %v413_v53 }
 0x145   :  { %v1033_v46 = vpop.eup %1032  ;;  %v442_v56 = vmul.f32 127.0, %v1031_v45  ;;  %v895_v58 = vcvt.f32.s32 %v1287_v48  ;;  %v893_v18 = vand.u32 2147483647, %v1287_v48  ;;  %v1323_v5 = vpop.xlane.xlu0 %386  ;;  %v489_v45 = vmul.f32 0.007874016, %v1276_v28 }
 0x146   :  { %v440_v54 = vmul.f32 127.0, %v1033_v46  ;;  %v887_v60 = vcvt.f32.s32 %v1290_v49  ;;  %v890_v26 = vand.u32 2147483648, %v1290_v49  ;;  %v1332_v46 = vmul.f32 0.007874016, %v375_v34 }
 0x147   :  { %v1300_v8 = vmul.f32 %v442_v56, %v1201_v9  ;;  %v896_v0 = vcvt.s32.f32 %v895_v58  ;;  %v1315_v9 = vmul.f32 0.007874016, %v366_v24  ;;  %v898_v24 = vand.u32 2147483648, %v1287_v48 }
 0x148   :  { %v1035_v55 = vpop.eup %1034  ;;  %v1297_v7 = vmul.f32 %v440_v54, %v1203_v10  ;;  %v888_v1 = vcvt.s32.f32 %v887_v60  ;;  %v1312_v10 = vmul.f32 0.007874016, %v372_v6  ;;  %v885_v6 = vand.u32 2147483647, %v1290_v49 }
 0x149   :  { %v1037_v57 = vpop.eup %1036  ;;  %v444_v61 = vmul.f32 127.0, %v1035_v55  ;;  %v897_v20 = vand.u32 2147483647, %v896_v0  ;;  %vm1334_vm1 = vcmp.lt.f32.partialorder %v893_v18, 8388608.0  ;;  %v917_v56 = vand.u32 2147483647, %v1300_v8  ;;  %v1347_v34 = vpop.xlane.xlu0 %392 }
 0x14a   :  { %v441_v62 = vmul.f32 127.0, %v1037_v57  ;;  %v903_v15 = vcvt.f32.s32 %v1297_v7  ;;  %v889_v25 = vand.u32 2147483647, %v888_v1  ;;  %vm1338_vm2 = vcmp.lt.f32.partialorder %v885_v6, 8388608.0 }
 0x14b   :  { %v1303_v2 = vmul.f32 %v444_v61, %v1213_v21  ;;  %v919_v21 = vcvt.f32.s32 %v1300_v8  ;;  %v899_v53 = vor.u32 %v898_v24, %v897_v20  ;;  %v922_v57 = vand.u32 2147483648, %v1300_v8 }
 0x14c   :  { %v1308_v11 = vmul.f32 %v441_v62, %v1215_v22  ;;  %v1039_v12 = vpop.eup %1038  ;;  %v1321_v22 = vpop.xlane.xlu1 %395  ;;  %v904_v35 = vcvt.s32.f32 %v903_v15  ;;  %v891_v54 = vor.u32 %v890_v26, %v889_v25  ;;  %v901_v61 = vand.u32 2147483647, %v1297_v7 }
 0x14d   :  { %v1041_v16 = vpop.eup %1040  ;;  %v935_v19 = vcvt.f32.s32 %v1303_v2  ;;  %v446_v36 = vmul.f32 127.0, %v1039_v12  ;;  %v418_v38 = vadd.f32 1e-05, %v1321_v22  ;;  %v920_v39 = vcvt.s32.f32 %v919_v21 }
 0x14e   :  { %v911_v23 = vcvt.f32.s32 %v1308_v11  ;;  %v443_v37 = vmul.f32 127.0, %v1041_v16  ;;  %v905_v62 = vand.u32 2147483647, %v904_v35  ;;  %v906_v12 = vand.u32 2147483648, %v1297_v7 }
 0x14f   :  { %v936_v40 = vcvt.s32.f32 %v935_v19  ;;  %v1351_v0 = vmul.f32 %v446_v36, %v1224_v30  ;;  %1046 = vrcp.f32 %v418_v38  ;;  %v921_v1 = vand.u32 2147483647, %v920_v39 }
 0x150   :  { %v912_v32 = vcvt.s32.f32 %v911_v23  ;;  %v1043_v55 = vpop.eup %1042  ;;  %v1345_v28 = vmul.f32 %v443_v37, %v1226_v31  ;;  %v914_v16 = vand.u32 2147483648, %v1308_v11  ;;  %v900_v31 = vsel %vm1334_vm1, %v899_v53, %v1287_v48  ;;  %v1371_v37 = vpop.xlane.xlu0 %398 }
 0x151   :  { %v1045_v60 = vpop.eup %1044  ;;  %v937_v15 = vand.u32 2147483647, %v936_v40  ;;  %v892_v18 = vsel %vm1338_vm2, %v891_v54, %v1290_v49  ;;  %v909_v21 = vand.u32 2147483647, %v1308_v11  ;;  %v938_v19 = vand.u32 2147483648, %v1303_v2  ;;  %v1388_v54 = vpop.xlane.xlu1 %401 }
 0x152   :  { %v913_v58 = vand.u32 2147483647, %v912_v32  ;;  %v927_v30 = vcvt.f32.s32 %v1345_v28  ;;  %v448_v20 = vmul.f32 127.0, %v1043_v55  ;;  %v445_v6 = vmul.f32 127.0, %v1045_v60 }
 0x153   :  { %v907_v25 = vor.u32 %v906_v12, %v905_v62  ;;  %v933_v24 = vand.u32 2147483647, %v1303_v2  ;;  %v951_v26 = vcvt.f32.s32 %v1351_v0  ;;  %vm1366_vm3 = vcmp.lt.f32.partialorder %v917_v56, 8388608.0 }
 0x154   :  { %v915_v23 = vor.u32 %v914_v16, %v913_v58  ;;  %v928_v32 = vcvt.s32.f32 %v927_v30  ;;  %v923_v49 = vor.u32 %v922_v57, %v921_v1  ;;  %v939_v35 = vor.u32 %v938_v19, %v937_v15  ;;  %v1413_v12 = vpop.xlane.xlu0 %404 }
 0x155   :  { %v493_v36 = vmul.f32 0.007874016, %v1284_v44  ;;  %v1374_v38 = vmul.f32 %v900_v31, %v1305_v3  ;;  %v1377_v39 = vmul.f32 %v892_v18, %v1310_v13  ;;  %vm1379_vm4 = vcmp.lt.f32.partialorder %v901_v61, 8388608.0 }
 0x156   :  { %vm910_vm5 = vcmp.lt.f32.partialorder %v909_v21, 8388608.0  ;;  %v929_v53 = vand.u32 2147483647, %v928_v32  ;;  %v1385_v27 = vmul.f32 %v448_v20, %v1235_v41  ;;  %v461_v44 = vmul.f32 %v445_v6, %v1241_v47 }
 0x157   :  { %v916_v52 = vsel %vm910_vm5, %v915_v23, %v1308_v11  ;;  %v908_v3 = vsel %vm1379_vm4, %v907_v25, %v1297_v7  ;;  %vm1393_vm6 = vcmp.lt.f32.partialorder %v933_v24, 8388608.0  ;;  %v952_v55 = vcvt.s32.f32 %v951_v26 }
 0x158   :  { %v415_v56 = vadd.f32 1e-05, %v1323_v5  ;;  %v924_v41 = vsel %vm1366_vm3, %v923_v49, %v1300_v8  ;;  %v940_v47 = vsel %vm1393_vm6, %v939_v35, %v1303_v2  ;;  %v930_v11 = vand.u32 2147483648, %v1345_v28 }
 0x159   :  { %v943_v57 = vcvt.f32.s32 %v461_v44  ;;  %v1405_v58 = vmul.f32 %v916_v52, %v489_v45  ;;  %v925_v7 = vand.u32 2147483647, %v1345_v28  ;;  %v420_v60 = vadd.f32 1e-05, %v1388_v54 }
 0x15a   :  { %1048 = vrcp.f32 %v415_v56  ;;  %v1410_v61 = vmul.f32 %v908_v3, %v1315_v9  ;;  %v931_v62 = vor.u32 %v930_v11, %v929_v53  ;;  %v967_v8 = vcvt.f32.s32 %v1385_v27 }
 0x15b   :  { %v944_v1 = vcvt.s32.f32 %v943_v57  ;;  %v953_v2 = vand.u32 2147483647, %v952_v55  ;;  %v941_v15 = vand.u32 2147483647, %v461_v44  ;;  %1050 = vrcp.f32 %v420_v60 }
 0x15c   :  { %v417_v45 = vadd.f32 1e-05, %v1347_v34  ;;  %v1047_v16 = vpop.eup %1046  ;;  %v1417_v31 = vmul.f32 %v940_v47, %v1328_v29  ;;  %v946_v21 = vand.u32 2147483648, %v461_v44  ;;  %v419_v9 = vadd.f32 1e-05, %v1371_v37 }
 0x15d   :  { %v945_v18 = vand.u32 2147483647, %v944_v1  ;;  %v534_v30 = vcombine.low %v1374_v38, %v1405_v58  ;;  %vm1422_vm7 = vcmp.lt.f32.partialorder %v925_v7, 8388608.0  ;;  %v421_v23 = vadd.f32 1e-05, %v1413_v12 }
 0x15e   :  { %1052 = vrcp.f32 %v417_v45  ;;  %v932_v20 = vsel %vm1422_vm7, %v931_v62, %v1345_v28  ;;  %v968_v29 = vcvt.s32.f32 %v967_v8  ;;  %v1431_v25 = vmul.f32 %v924_v41, %v1312_v10 }
 0x15f   :  { %v947_v6 = vor.u32 %v946_v21, %v945_v18  ;;  %1054 = vrcp.f32 %v419_v9  ;;  %v954_v24 = vand.u32 2147483648, %v1351_v0  ;;  %vm942_vm8 = vcmp.lt.f32.partialorder %v941_v15, 8388608.0 }
 0x160   :  { %v450_v26 = vmul.f32 127.0, %v1047_v16  ;;  %v518_v32 = vcombine.low %v1377_v39, %v1410_v61  ;;  %v949_v48 = vand.u32 2147483647, %v1351_v0  ;;  %1056 = vrcp.f32 %v421_v23 }
 0x161   :  { %v948_v49 = vsel %vm942_vm8, %v947_v6, %v461_v44  ;;  %v550_v28 = vcombine.low %v1431_v25, %v1417_v31  ;;  %v955_v35 = vor.u32 %v954_v24, %v953_v2  ;;  %v1440_v40 = vmul.f32 %v932_v20, %v1332_v46 }
 0x162   :  { %v1442_v10 = vmul.f32 %v948_v49, %v493_v36  ;;  %v542_v52 = vrot.slane %v534_v30, %v1164_v17  ;;  %v969_v53 = vand.u32 2147483647, %v968_v29  ;;  %v1448_v13 = vmul.f32 %v450_v26, %v1244_v50 }
 0x163   :  { %v526_v44 = vrot.slane %v518_v32, %v1164_v17  ;;  %vm950_vm9 = vcmp.lt.f32.partialorder %v949_v48, 8388608.0  ;;  %v965_v55 = vand.u32 2147483647, %v1385_v27  ;;  %v970_v56 = vand.u32 2147483648, %v1385_v27 }
 0x164   :  { %v566_v3 = vcombine.low %v1440_v40, %v1442_v10  ;;  %v558_v46 = vrot.slane %v550_v28, %v1164_v17  ;;  %v956_v36 = vsel %vm950_vm9, %v955_v35, %v1351_v0  ;;  %v494_v11 = vmul.f32 0.007874016, %v1279_v33 }
 0x165   :  { %v971_v57 = vor.u32 %v970_v56, %v969_v53  ;;  %v582_v7 = vcombine.low %v526_v44, %v542_v52  ;;  %v496_v50 = vmul.f32 0.007874016, %v1282_v43  ;;  %v983_v60 = vcvt.f32.s32 %v1448_v13 }
 0x166   :  { %v574_v41 = vrot.slane %v566_v3, %v1164_v17  ;;  %v1459_v2 = vmul.f32 %v956_v36, %v494_v11  ;;  %vm1461_vm10 = vcmp.lt.f32.partialorder %v965_v55, 8388608.0  ;;  %v1466_v0 = vmul.f32 0.007874016, %v1321_v22 }
 0x167   :  { %v1049_v47 = vpop.eup %1048  ;;  %v1472_v43 = vmul.f32 0.007874016, %v1323_v5  ;;  %v972_v9 = vsel %vm1461_vm10, %v971_v57, %v1385_v27  ;;  %v1481_v30 = vmul.f32 0.007874016, %v1388_v54  ;;  %v1484_v22 = vrot.slane %v582_v7, %v1176_v42 }
 0x168   :  { %v447_v62 = vmul.f32 127.0, %v1049_v47  ;;  %v614_v8 = vcombine.low %v558_v46, %v574_v41  ;;  %v1051_v1 = vpop.eup %1050  ;;  %v615_v45 = vcombine.high %v558_v46, %v574_v41  ;;  %v984_v23 = vcvt.s32.f32 %v983_v60 }
 0x169   :  { %v452_v16 = vmul.f32 127.0, %v1051_v1  ;;  %v497_v29 = vmul.f32 0.007874016, %v1347_v34  ;;  %v1494_v32 = vmul.f32 %v972_v9, %v496_v50  ;;  %v981_v48 = vand.u32 2147483647, %v1448_v13 }
 0x16a   :  { %v1469_v33 = vmul.f32 %v447_v62, %v1246_v51  ;;  %v1475_v18 = vrot.slane %v614_v8, %v1176_v42  ;;  %v583_v51 = vcombine.high %v526_v44, %v542_v52  ;;  %v1492_v54 = vrot.slane %v615_v45, %v1176_v42 }
 0x16b   :  { %v1053_v21 = vpop.eup %1052  ;;  %v468_v20 = vmul.f32 %v452_v16, %v1255_v59  ;;  %v985_v53 = vand.u32 2147483647, %v984_v23  ;;  %v986_v3 = vand.u32 2147483648, %v1448_v13  ;;  %vm1508_vm11 = vcmp.lt.f32.partialorder %v981_v48, 8388608.0 }
 0x16c   :  { %v1055_v19 = vpop.eup %1054  ;;  %v959_v5 = vcvt.f32.s32 %v1469_v33  ;;  %v449_v6 = vmul.f32 127.0, %v1053_v21  ;;  %v647_v27 = vcombine.high %v1484_v22, %v1475_v18  ;;  %v1501_v52 = vrot.slane %v583_v51, %v1176_v42 }
 0x16d   :  { %v451_v24 = vmul.f32 127.0, %v1055_v19  ;;  %v1057_v26 = vpop.eup %1056  ;;  %v999_v28 = vcvt.f32.s32 %v468_v20  ;;  %v957_v56 = vand.u32 2147483647, %v1469_v33  ;;  %v962_v46 = vand.u32 2147483648, %v1469_v33 }
 0x16e   :  { %v960_v49 = vcvt.s32.f32 %v959_v5  ;;  %v465_v35 = vmul.f32 %v449_v6, %v1260_v63  ;;  %v453_v34 = vmul.f32 127.0, %v1057_v26  ;;  %792 = vrot.lane.b32.xlu1 %v647_v27, %s1111_s18  ;;  %v648_v63 = vcombine.low %v1501_v52, %v1492_v54 }
 0x16f   :  { %v467_v59 = vmul.f32 %v451_v24, %v1266_v4  ;;  %v1000_v55 = vcvt.s32.f32 %v999_v28  ;;  %v997_v4 = vand.u32 2147483647, %v468_v20  ;;  %v1002_v47 = vand.u32 2147483648, %v468_v20 }
 0x170   :  { %v961_v44 = vand.u32 2147483647, %v960_v49  ;;  %v975_v36 = vcvt.f32.s32 %v465_v35  ;;  %v469_v60 = vmul.f32 %v453_v34, %v1271_v14  ;;  %v987_v62 = vor.u32 %v986_v3, %v985_v53 }
 0x171   :  { %v1001_v41 = vand.u32 2147483647, %v1000_v55  ;;  %v991_v11 = vcvt.f32.s32 %v467_v59  ;;  %v973_v1 = vand.u32 2147483647, %v465_v35  ;;  %vm1514_vm12 = vcmp.lt.f32.partialorder %v957_v56, 8388608.0 }
 0x172   :  { %v963_v7 = vor.u32 %v962_v46, %v961_v44  ;;  %v976_v50 = vcvt.s32.f32 %v975_v36  ;;  %800 = vrot.lane.b32.xlu1 %v648_v63, %s1110_s17  ;;  %v978_v21 = vand.u32 2147483648, %v465_v35  ;;  %v1007_v9 = vcvt.f32.s32 %v469_v60 }
 0x173   :  { %v1003_v8 = vor.u32 %v1002_v47, %v1001_v41  ;;  %v992_v15 = vcvt.s32.f32 %v991_v11  ;;  %vm1518_vm13 = vcmp.lt.f32.partialorder %v997_v4, 8388608.0  ;;  %v989_v19 = vand.u32 2147483647, %v467_v59 }
 0x174   :  { %v977_v16 = vand.u32 2147483647, %v976_v50  ;;  %v994_v14 = vand.u32 2147483648, %v467_v59  ;;  %v964_v5 = vsel %vm1514_vm12, %v963_v7, %v1469_v33  ;;  %v1008_v27 = vcvt.s32.f32 %v1007_v9 }
 0x175   :  { %v993_v23 = vand.u32 2147483647, %v992_v15  ;;  %v1004_v6 = vsel %vm1518_vm13, %v1003_v8, %v468_v20  ;;  %vm974_vm14 = vcmp.lt.f32.partialorder %v973_v1, 8388608.0  ;;  %v1005_v48 = vand.u32 2147483647, %v469_v60 }
 0x176   :  { %v979_v24 = vor.u32 %v978_v21, %v977_v16  ;;  %v646_v49 = vcombine.low %v1484_v22, %v1475_v18  ;;  %v988_v28 = vsel %vm1508_vm11, %v987_v62, %v1448_v13  ;;  %v1009_v53 = vand.u32 2147483647, %v1008_v27 }
 0x177   :  { %v995_v26 = vor.u32 %v994_v14, %v993_v23  ;;  %v1010_v3 = vand.u32 2147483648, %v469_v60  ;;  %v511_v33 = vmul.f32 %v964_v5, %v1472_v43  ;;  %v516_v44 = vmul.f32 %v1004_v6, %v1481_v30 }
 0x178   :  { %v980_v34 = vsel %vm974_vm14, %v979_v24, %v465_v35  ;;  %vm990_vm15 = vcmp.lt.f32.partialorder %v989_v19, 8388608.0  ;;  %v499_v56 = vmul.f32 0.007874016, %v1371_v37  ;;  %v501_v36 = vmul.f32 0.007874016, %v1413_v12 }
 0x179   :  { %v513_v20 = vmul.f32 %v980_v34, %v497_v29  ;;  %v996_v55 = vsel %vm990_vm15, %v995_v26, %v467_v59  ;;  %v1011_v46 = vor.u32 %v1010_v3, %v1009_v53  ;;  %v654_v63 = vcombine.low %v1459_v2, %v1494_v32 }
 0x17a   :  { %v514_v13 = vmul.f32 %v988_v28, %v1466_v0  ;;  %vm1006_vm1 = vcmp.lt.f32.partialorder %v1005_v48, 8388608.0  ;;  %v515_v30 = vmul.f32 %v996_v55, %v499_v56  ;;  %v567_v37 = vcombine.high %v1440_v40, %v1442_v10 }
 0x17b   :  { %v670_v35 = vcombine.low %v511_v33, %v513_v20  ;;  %v1012_v4 = vsel %vm1006_vm1, %v1011_v46, %v469_v60  ;;  %v662_v59 = vrot.slane %v654_v63, %v1164_v17  ;;  %v551_v11 = vcombine.high %v1431_v25, %v1417_v31 }
 0x17c   :  { %v686_v41 = vcombine.low %v514_v13, %v516_v44  ;;  %v517_v29 = vmul.f32 %v1012_v4, %v501_v36  ;;  %v535_v0 = vcombine.high %v1374_v38, %v1405_v58  ;;  %v687_v57 = vcombine.high %v514_v13, %v516_v44 }
 0x17d   :  { %v678_v43 = vrot.slane %v670_v35, %v1164_v17  ;;  %v671_v7 = vcombine.high %v511_v33, %v513_v20  ;;  %v519_v1 = vcombine.high %v1377_v39, %v1410_v61  ;;  %v655_v40 = vcombine.high %v1459_v2, %v1494_v32 }
 0x17e   :  { %v702_v47 = vcombine.low %v515_v30, %v517_v29  ;;  %v703_v12 = vcombine.high %v515_v30, %v517_v29  ;;  %v694_v50 = vrot.slane %v686_v41, %v1164_v17  ;;  %v581_v10 = vrot.slane %v567_v37, %v1164_v17 }
 0x17f   :  { %v719_v62 = vcombine.high %v662_v59, %v678_v43  ;;  %v718_v8 = vcombine.low %v662_v59, %v678_v43  ;;  %v565_v58 = vrot.slane %v551_v11, %v1164_v17  ;;  %v549_v15 = vrot.slane %v535_v0, %v1164_v17 }
 0x180   :  { %v710_v60 = vrot.slane %v702_v47, %v1164_v17  ;;  %v717_v31 = vrot.slane %v703_v12, %v1164_v17  ;;  %v701_v45 = vrot.slane %v687_v57, %v1164_v17  ;;  %v685_v16 = vrot.slane %v671_v7, %v1164_v17 }
 0x181   :  { %v733_v21 = vrot.slane %v719_v62, %v1176_v42  ;;  %v726_v61 = vrot.slane %v718_v8, %v1176_v42  ;;  %v533_v32 = vrot.slane %v519_v1, %v1164_v17  ;;  %v669_v9 = vrot.slane %v655_v40, %v1164_v17 }
 0x182   :  { %v751_v25 = vcombine.high %v694_v50, %v710_v60  ;;  %v750_v38 = vcombine.low %v694_v50, %v710_v60  ;;  %v766_v23 = vcombine.low %v701_v45, %v717_v31  ;;  %v630_v14 = vcombine.low %v565_v58, %v581_v10 }
 0x183   :  { %v734_v6 = vcombine.low %v669_v9, %v685_v16  ;;  %v598_v24 = vcombine.low %v533_v32, %v549_v15  ;;  %v649_v26 = vcombine.high %v1501_v52, %v1492_v54  ;;  %v767_v33 = vcombine.high %v701_v45, %v717_v31 }
 0x184   :  { %v765_v39 = vrot.slane %v751_v25, %v1176_v42  ;;  %v758_v2 = vrot.slane %v750_v38, %v1176_v42  ;;  %v774_v48 = vrot.slane %v766_v23, %v1176_v42  ;;  %v638_v28 = vrot.slane %v630_v14, %v1176_v42 }
 0x185   :  { %v742_v17 = vrot.slane %v734_v6, %v1176_v42  ;;  %v606_v34 = vrot.slane %v598_v24, %v1176_v42  ;;  %v631_v44 = vcombine.high %v565_v58, %v581_v10  ;;  %v735_v54 = vcombine.high %v669_v9, %v685_v16 }
 0x186   :  { %v784_v51 = vcombine.low %v733_v21, %v765_v39  ;;  %v783_v19 = vcombine.high %v726_v61, %v758_v2  ;;  %v782_v5 = vcombine.low %v726_v61, %v758_v2  ;;  %v785_v27 = vcombine.high %v733_v21, %v765_v39 }
 0x187   :  { %v786_v53 = vcombine.low %v742_v17, %v774_v48  ;;  %v650_v3 = vcombine.low %v606_v34, %v638_v28  ;;  %v599_v52 = vcombine.high %v533_v32, %v549_v15  ;;  %v787_v20 = vcombine.high %v742_v17, %v774_v48 }
 0x188   :  { %802 = vrot.lane.b32.xlu1 %v784_v51, %s1110_s17  ;;  %794 = vrot.lane.b32.xlu0 %v783_v19, %s1111_s18  ;;  %v651_v55 = vcombine.high %v606_v34, %v638_v28  ;;  %v781_v56 = vrot.slane %v767_v33, %v1176_v42  ;;  %v645_v46 = vrot.slane %v631_v44, %v1176_v42  ;;  %vm848_vm2 = vcmask 261120  }
 0x189   :  { %v749_v36 = vrot.slane %v735_v54, %v1176_v42  ;;  %v613_v63 = vrot.slane %v599_v52, %v1176_v42  ;;  %vm851_vm3 = vcmask 392192   ;;  %vm854_vm4 = vcmask 523264  }
 0x18a   :  { %vm857_vm5 = vcmask 654336   ;;  %vm860_vm6 = vcmask 785408   ;;  %vm863_vm7 = vcmask 916480  }
 0x18b   :  { %v788_v13 = vcombine.low %v749_v36, %v781_v56  ;;  %v652_v35 = vcombine.low %v613_v63, %v645_v46  ;;  %v789_v4 = vcombine.high %v749_v36, %v781_v56  ;;  %v653_v41 = vcombine.high %v613_v63, %v645_v46 }
 0x18c   :  { %810 = vrot.lane.b32.xlu1 %v785_v27, %s1109_s16  ;;  %808 = vrot.lane.b32.xlu0 %v649_v26, %s1109_s16 }
 0x190   :  { %818 = vrot.lane.b32.xlu1 %v786_v53, %s1108_s0  ;;  %816 = vrot.lane.b32.xlu0 %v650_v3, %s1108_s0 }
 0x194   :  { %826 = vrot.lane.b32.xlu1 %v787_v20, %s1107_s15  ;;  %824 = vrot.lane.b32.xlu0 %v651_v55, %s1107_s15 }
 0x198   :  { %834 = vrot.lane.b32.xlu1 %v788_v13, %s1105_s13  ;;  %832 = vrot.lane.b32.xlu0 %v652_v35, %s1105_s13 }
 0x19c   :  { %842 = vrot.lane.b32.xlu1 %v789_v4, %s1106_s14  ;;  %840 = vrot.lane.b32.xlu0 %v653_v41, %s1106_s14 }
 0x1e0   :  { %v793_v43 = vpop.permute.xlu1 %792 }
 0x1e1   :  { %v846_v7 = vsel %vm357_vm0, %v646_v49, %v793_v43 }
 0x1e4   :  { %v801_v30 = vpop.permute.xlu1 %800 }
 0x1e5   :  { %v849_v50 = vsel %vm848_vm2, %v846_v7, %v801_v30 }
 0x1fa   :  { %v803_v29 = vpop.permute.xlu1 %802  ;;  %v795_v59 = vpop.permute.xlu0 %794 }
 0x1fb   :  { %v847_v57 = vsel %vm357_vm0, %v782_v5, %v795_v59 }
 0x1fc   :  { %v850_v60 = vsel %vm848_vm2, %v847_v57, %v803_v29 }
 0x1fe   :  { %v811_v37 = vpop.permute.xlu1 %810  ;;  %v809_v47 = vpop.permute.xlu0 %808 }
 0x1ff   :  { %v853_v1 = vsel %vm851_vm3, %v850_v60, %v811_v37  ;;  %v852_v40 = vsel %vm851_vm3, %v849_v50, %v809_v47 }
 0x202   :  { %v819_v12 = vpop.permute.xlu1 %818  ;;  %v817_v42 = vpop.permute.xlu0 %816 }
 0x203   :  { %v856_v10 = vsel %vm854_vm4, %v853_v1, %v819_v12  ;;  %v855_v31 = vsel %vm854_vm4, %v852_v40, %v817_v42 }
 0x206   :  { %v827_v11 = vpop.permute.xlu1 %826  ;;  %v825_v0 = vpop.permute.xlu0 %824 }
 0x207   :  { %v859_v25 = vsel %vm857_vm5, %v856_v10, %v827_v11  ;;  %v858_v38 = vsel %vm857_vm5, %v855_v31, %v825_v0 }
 0x20a   :  { %v835_v62 = vpop.permute.xlu1 %834  ;;  %v833_v8 = vpop.permute.xlu0 %832 }
 0x20b   :  { %v862_v58 = vsel %vm860_vm6, %v859_v25, %v835_v62  ;;  %v861_v18 = vsel %vm860_vm6, %v858_v38, %v833_v8 }
 0x20e   :  { %v843_v22 = vpop.permute.xlu1 %842  ;;  %v841_v49 = vpop.permute.xlu0 %840 }
 0x20f   :  { %v865_v15 = vsel %vm863_vm7, %v862_v58, %v843_v22  ;;  %v864_v45 = vsel %vm863_vm7, %v861_v18, %v841_v49 }
 0x210   :  { %867 = vst [vmem:[#allocation5 + $0x8] sm:$0xff] %v865_v15  ;;  %866 = vst [vmem:[#allocation5] sm:$0xff] %v864_v45 }
 0x211   :  { %1089 = shalt.err (!%p1086_p9)
}
 0x212   :  { %879 = dma.vmem_to_hbm [thread:$0]  %s874_s20, 256, %s1599_s1, [#allocation4], %s1103_s9, %s1103_s9, %s1104_s10  }
 0x213   :  { %1100 = dma.done.wait [#allocation4], 256  }
 0x214   :  { %1101 = vsyncadd [#allocation4], 4294967040 }
 0x215   :  { %883 = vsyncpa [#allocation3], 1 }
 0x216   :  { %884 = vsyncpa [#allocation4], 1 }

</bundles_post_ra>
